<compile_context>
chip_gen: v6e
topology: v6e:2x2x1
jax: 0.10.0
libtpu: 0.0.40
codegen_flags: <defaults>
</compile_context>

<pallas_src>
import functools

import jax
import jax.numpy as jnp
from jax import lax
from jax.experimental import pallas as pl
from jax.experimental.pallas import tpu as pltpu

LANE = 128


def _round_up(x, m):
    return ((x + m - 1) // m) * m


def _vmem_capacity_bytes():
    try:
        return int(pltpu.get_tpu_info().vmem_capacity_bytes)
    except Exception:
        return 64 * 1024 * 1024  # conservative default = v7x per-TensorCore VMEM


def _resident_spec(shape, index_map):
    """BlockSpec for blocks whose index never changes: single-buffer them to save VMEM."""
    try:
        return pl.BlockSpec(shape, index_map, pipeline_mode=pl.Buffered(1))
    except Exception:  # pipeline_mode / Buffered not available -> default double buffering
        return pl.BlockSpec(shape, index_map)


def _compiler_params(semantics, est_vmem_bytes=0):
    kwargs = {"dimension_semantics": semantics}
    cap = _vmem_capacity_bytes()
    if est_vmem_bytes > 24 * 1024 * 1024:
        # Clamp to the physical per-core budget (v7x: 64 MiB) with headroom, never a hard 100 MiB.
        kwargs["vmem_limit_bytes"] = int(min(est_vmem_bytes * 5 // 4 + (2 << 20), 0.85 * cap))
    return pltpu.CompilerParams(**kwargs)


def _choose_tiling(n, c1p, c2p, xw_itemsize, a_itemsize):
    """Pick (row tile, padded node count, K tile) so the aggregate working set fits VMEM.

    Row tiles are multiples of 32 (int8 sublane packing). We prefer the largest tile that
    (a) keeps the working set under ~55% of physical VMEM, (b) leaves >= 2 row grid steps
    (so the 'parallel' axis spans both TensorCores on v7x), and (c) pads n by < 12.5%.
    """
    cap = _vmem_capacity_bytes()
    budget = int(0.55 * cap)
    c_pad = max(c1p, c2p)
    for tile in (1024, 512, 256, 128, 64, 32):
        n_pad = _round_up(n, tile)
        rows = n_pad // tile
        if rows < 2 and tile > 32:
            continue                      # keep the row grid >= 2 steps (megacore on v7x)
        if (n_pad - n) * 8 > n_pad and tile > 32:
            continue                      # avoid > 12.5% zero-padding of the adjacency
        ws = (2 * tile * n_pad * a_itemsize          # adjacency stripe, double-buffered
              + n_pad * c_pad * xw_itemsize          # resident (single-buffered) XW
              + 2 * tile * c_pad * xw_itemsize       # self-loop row block
              + tile * c_pad * 4                     # f32 accumulator scratch
              + 2 * tile * c_pad * 4                 # output blocks
              + 2 * c1p * c2p * 4)                   # fused next-layer weight
        if ws <= budget:
            return tile, n_pad, n_pad                # XW fully resident (single K step)
    # Very large graphs: K-tile the aggregation so the working set stays bounded.
    tile = 512
    return tile, _round_up(n, tile), tile


# --------------------------------------------------------------------------------------------------
# Kernel 1: column degrees of (A + I) -> deg^{-1/2}, plus an int8 copy of A.
# --------------------------------------------------------------------------------------------------
def degree_cast_kernel(a_ref, dinv_ref, a_lo_ref):
    i = pl.program_id(0)
    a = a_ref[...]
    a_lo_ref[...] = a.astype(a_lo_ref.dtype)  # {0,1} adjacency is exact in int8

    @pl.when(i == 0)
    def _():
        dinv_ref[...] = jnp.zeros_like(dinv_ref)

    # Partial column sums (sublane reduce) accumulated in the resident (1, n) output block.
    dinv_ref[...] += jnp.sum(a, axis=0, keepdims=True)

    @pl.when(i == pl.num_programs(0) - 1)
    def _():
        # add_remaining_self_loops(fill_value=1.0): input adjacency is assumed to have zero diagonal.
        deg = dinv_ref[...] + 1.0
        dinv_ref[...] = jnp.where(deg > 0.0, lax.rsqrt(deg), 0.0)


def degree_and_cast(a, row_tile, lo_dtype):
    n = a.shape[0]
    est = (2 * row_tile * n * (a.dtype.itemsize + jnp.dtype(lo_dtype).itemsize) + 8 * n)
    return pl.pallas_call(
        degree_cast_kernel,
        out_shape=(
            jax.ShapeDtypeStruct((1, n), jnp.float32),
            jax.ShapeDtypeStruct((n, n), lo_dtype),
        ),
        grid_spec=pltpu.PrefetchScalarGridSpec(
            num_scalar_prefetch=0,
            grid=(n // row_tile,),
            in_specs=[pl.BlockSpec((row_tile, n), lambda i: (i, 0))],
            out_specs=(
                pl.BlockSpec((1, n), lambda i: (0, 0)),         # resident degree accumulator
                pl.BlockSpec((row_tile, n), lambda i: (i, 0)),  # low-precision adjacency copy
            ),
        ),
        compiler_params=_compiler_params(("arbitrary",), est),
    )(a)


# --------------------------------------------------------------------------------------------------
# Kernel 2: layer-1 feature transform, hoisted out of the aggregation loop:  d ⊙ (X @ W_pad).
# --------------------------------------------------------------------------------------------------
def xw_scale_kernel(x_ref, w_ref, d_ref, o_ref):
    xw = jnp.dot(
        x_ref[...].astype(o_ref.dtype),
        w_ref[...].astype(o_ref.dtype),
        preferred_element_type=jnp.float32,
    )
    o_ref[...] = (d_ref[...] * xw).astype(o_ref.dtype)


def xw_scaled(x, w_pad, d_col, tile, out_dtype):
    n, f = x.shape
    c_pad = w_pad.shape[1]
    est = (2 * tile * f * x.dtype.itemsize
           + f * c_pad * w_pad.dtype.itemsize
           + 2 * tile * c_pad * jnp.dtype(out_dtype).itemsize
           + 2 * tile * 4)
    return pl.pallas_call(
        xw_scale_kernel,
        out_shape=jax.ShapeDtypeStruct((n, c_pad), out_dtype),
        grid_spec=pltpu.PrefetchScalarGridSpec(
            num_scalar_prefetch=0,
            grid=(n // tile,),
            in_specs=[
                pl.BlockSpec((tile, f), lambda i: (i, 0)),
                _resident_spec((f, c_pad), lambda i: (0, 0)),   # constant -> single buffer
                pl.BlockSpec((tile, 1), lambda i: (i, 0)),
            ],
            out_specs=pl.BlockSpec((tile, c_pad), lambda i: (i, 0)),
        ),
        compiler_params=_compiler_params(("parallel",), est),
    )(x, w_pad, d_col)


# --------------------------------------------------------------------------------------------------
# Kernel 3: neighborhood aggregation (normalization fused, XW precomputed, K-tiled accumulation).
#   out = d_row ⊙ (A_tile @ XW_scaled + XW_scaled[rows]) + b   [+ ReLU]   [then fused  d ⊙ (H @ W2)]
# --------------------------------------------------------------------------------------------------
def aggregate_kernel(*refs, apply_relu, fuse_next):
    if fuse_next:
        a_ref, xw_ref, xw_row_ref, d_ref, b_ref, w_next_ref, o_ref, acc_ref = refs
    else:
        a_ref, xw_ref, xw_row_ref, d_ref, b_ref, o_ref, acc_ref = refs

    k = pl.program_id(1)

    @pl.when(k == 0)
    def _():
        acc_ref[...] = jnp.zeros_like(acc_ref)

    # int8 {0,1} adjacency is upcast on the VPU right before the MXU matmul (hidden under MXU).
    a = a_ref[...].astype(xw_ref.dtype)
    acc_ref[...] += jnp.dot(a, xw_ref[...], preferred_element_type=jnp.float32)

    @pl.when(k == pl.num_programs(1) - 1)
    def _():
        # Self-loop contribution + D^{-1/2} row scaling + bias.
        agg = acc_ref[...] + xw_row_ref[...].astype(jnp.float32)
        out = d_ref[...] * agg + b_ref[...]
        if apply_relu:
            out = jnp.maximum(out, 0.0)
        # Dropout (p=0.5) is identity in eval mode; BatchNorm disabled (with_batch_norm=False).
        if fuse_next:
            # Fused next-layer feature transform: emit d ⊙ (H @ W2) directly (H never hits HBM).
            h = out.astype(w_next_ref.dtype)
            xw2 = jnp.dot(h, w_next_ref[...], preferred_element_type=jnp.float32)
            o_ref[...] = (d_ref[...] * xw2).astype(o_ref.dtype)
        else:
            o_ref[...] = out.astype(o_ref.dtype)


def aggregate(a_lo, xw_s, d_col, b_pad, *, tile, tk, apply_relu, out_dtype, w_next=None):
    n = a_lo.shape[0]
    c_pad = xw_s.shape[1]
    fuse_next = w_next is not None
    o_cols = w_next.shape[1] if fuse_next else c_pad
    kt = n // tk
    xw_item = xw_s.dtype.itemsize

    est = (2 * tile * tk * a_lo.dtype.itemsize
           + (1 if kt == 1 else 2) * tk * c_pad * xw_item
           + 2 * tile * c_pad * xw_item
           + tile * c_pad * 4
           + 2 * tile * o_cols * jnp.dtype(out_dtype).itemsize
           + 2 * tile * 4 + 2 * c_pad * 4)
    if fuse_next:
        est += c_pad * o_cols * w_next.dtype.itemsize

    if kt == 1:
        xw_spec = _resident_spec((tk, c_pad), lambda i, k: (0, 0))   # resident, single-buffered
    else:
        xw_spec = pl.BlockSpec((tk, c_pad), lambda i, k: (k, 0))     # streamed along K

    in_specs = [
        pl.BlockSpec((tile, tk), lambda i, k: (i, k)),               # int8 adjacency block
        xw_spec,                                                     # d ⊙ XW (K block)
        pl.BlockSpec((tile, c_pad), lambda i, k: (i, 0)),            # d ⊙ XW rows (self loop)
        pl.BlockSpec((tile, 1), lambda i, k: (i, 0)),                # deg^{-1/2} for these rows
        _resident_spec((1, c_pad), lambda i, k: (0, 0)),             # bias row
    ]
    operands = [a_lo, xw_s, xw_s, d_col, b_pad]
    if fuse_next:
        in_specs.append(_resident_spec((c_pad, o_cols), lambda i, k: (0, 0)))  # next-layer weight
        operands.append(w_next)

    kernel = functools.partial(aggregate_kernel, apply_relu=apply_relu, fuse_next=fuse_next)
    return pl.pallas_call(
        kernel,
        out_shape=jax.ShapeDtypeStruct((n, o_cols), out_dtype),
        grid_spec=pltpu.PrefetchScalarGridSpec(
            num_scalar_prefetch=0,
            grid=(n // tile, kt),                                    # reduction axis last
            in_specs=in_specs,
            out_specs=pl.BlockSpec((tile, o_cols), lambda i, k: (i, 0)),
            scratch_shapes=[pltpu.VMEM((tile, c_pad), jnp.float32)],
        ),
        compiler_params=_compiler_params(("parallel", "arbitrary"), est),
    )(*operands)


# --------------------------------------------------------------------------------------------------
# Forward pass (two ChainableGCNConv layers, ReLU between, dropout = identity in eval).
# --------------------------------------------------------------------------------------------------
def gcn_forward(a, x, w1, b1, w2, b2, *, compute_dtype=jnp.bfloat16, adj_store_dtype=jnp.int8):
    n = a.shape[0]
    b1 = jnp.asarray(b1).reshape(1, -1)
    b2 = jnp.asarray(b2).reshape(1, -1)
    n_classes = w2.shape[1]
    c1p = _round_up(w1.shape[1], LANE)  # hidden width, lane-dense
    c2p = _round_up(n_classes, LANE)    # class width, lane-dense
    xw_item = jnp.dtype(compute_dtype).itemsize
    a_item = jnp.dtype(adj_store_dtype).itemsize

    tile, n_pad, tk = _choose_tiling(n, c1p, c2p, xw_item, a_item)

    # Zero-pad graph + parameters: padded nodes are isolated (deg=1 self loop only), their rows are
    # sliced off at the end, and they contribute nothing to real rows -> semantics unchanged.
    if n_pad != n:
        a = jnp.zeros((n_pad, n_pad), a.dtype).at[:n, :n].set(a)
        x = jnp.zeros((n_pad, x.shape[1]), x.dtype).at[:n, :].set(x)
    w1p = jnp.zeros((w1.shape[0], c1p), w1.dtype).at[:, : w1.shape[1]].set(w1)
    b1p = jnp.zeros((1, c1p), jnp.float32).at[:, : b1.shape[1]].set(b1.astype(jnp.float32))
    w2p = jnp.zeros((c1p, c2p), compute_dtype).at[: w2.shape[0], :n_classes].set(w2.astype(compute_dtype))
    b2p = jnp.zeros((1, c2p), jnp.float32).at[:, : b2.shape[1]].set(b2.astype(jnp.float32))

    # Row tile for the degree/cast pass (streams full-width f32 rows) -> keep it inside the budget.
    budget = int(0.55 * _vmem_capacity_bytes())
    deg_tile = tile
    while deg_tile > 32 and 2 * deg_tile * n_pad * (a.dtype.itemsize + a_item) > budget:
        deg_tile //= 2

    # Pass 1: deg^{-1/2} of (A + I) and an int8 copy of A (A_norm never materialized).
    dinv_row, a_lo = degree_and_cast(a, deg_tile, adj_store_dtype)
    d_col = dinv_row.reshape(n_pad, 1)

    # Pass 2: layer-1 feature transform  d ⊙ (X @ W1), hoisted out of the aggregation loop.
    xw1 = xw_scaled(x, w1p, d_col, tile, compute_dtype)

    # Pass 3: layer-1 aggregation + ReLU, fused with layer-2 feature transform:
    #   xw2 = d ⊙ ( ReLU(A_norm @ (X W1) + b1) @ W2 )
    xw2 = aggregate(a_lo, xw1, d_col, b1p, tile=tile, tk=tk, apply_relu=True,
                    out_dtype=compute_dtype, w_next=w2p)

    # Pass 4: layer-2 aggregation -> logits.
    out = aggregate(a_lo, xw2, d_col, b2p, tile=tile, tk=tk, apply_relu=False,
                    out_dtype=jnp.float32)
    return out[:n, :n_classes]


def ref_forward(a, x, w1, b1, w2, b2):
    hi = jax.lax.Precision.HIGHEST
    n = a.shape[0]
    a_sl = a + jnp.eye(n, dtype=a.dtype)
    deg = a_sl.sum(axis=0)
    d = jnp.where(deg > 0, deg ** -0.5, 0.0)
    a_n = d[:, None] * a_sl * d[None, :]
    h = jnp.maximum(jnp.dot(a_n, jnp.dot(x, w1, precision=hi), precision=hi) + b1, 0.0)
    return jnp.dot(a_n, jnp.dot(h, w2, precision=hi), precision=hi) + b2


def glorot(key, shape):
    limit = (6.0 / (shape[0] + shape[1])) ** 0.5
    return jax.random.uniform(key, shape, jnp.float32, -limit, limit)


if __name__ == "__main__":
    N_NODES, N_FEATURES, N_FILTERS, N_CLASSES = 128, 32, 64, 8

    key = jax.random.PRNGKey(0)
    k_adj, k_x, k_w1, k_b1, k_w2, k_b2 = jax.random.split(key, 6)

    # Synthetic undirected graph: symmetric 0/1 adjacency without self loops.
    upper = jnp.triu((jax.random.uniform(k_adj, (N_NODES, N_NODES)) < 0.05).astype(jnp.float32), k=1)
    adj = upper + upper.T

    x = jax.random.normal(k_x, (N_NODES, N_FEATURES), dtype=jnp.float32)
    w1 = glorot(k_w1, (N_FEATURES, N_FILTERS))
    b1 = 0.1 * jax.random.normal(k_b1, (1, N_FILTERS), dtype=jnp.float32)
    w2 = glorot(k_w2, (N_FILTERS, N_CLASSES))
    b2 = 0.1 * jax.random.normal(k_b2, (1, N_CLASSES), dtype=jnp.float32)

    ref = jax.block_until_ready(ref_forward(adj, x, w1, b1, w2, b2))

    # Default path: int8 adjacency stream, bf16 feature streams, f32 MXU accumulation.
    out = jax.block_until_ready(gcn_forward(adj, x, w1, b1, w2, b2))
    assert out.shape == (N_NODES, N_CLASSES)
    err_bf16 = float(jnp.max(jnp.abs(out - ref)))
    assert jnp.allclose(out, ref, atol=5e-2, rtol=5e-2), err_bf16

    # Full f32 feature path (structural exactness check).
    out_f32 = jax.block_until_ready(gcn_forward(adj, x, w1, b1, w2, b2, compute_dtype=jnp.float32))
    err_f32 = float(jnp.max(jnp.abs(out_f32 - ref)))
    assert jnp.allclose(out_f32, ref, atol=2e-2, rtol=2e-2), err_f32

    # Non-divisible node count -> exercises the zero-padding path (n padded to a tile multiple).
    n_odd = 100
    ref_odd = jax.block_until_ready(
        ref_forward(adj[:n_odd, :n_odd], x[:n_odd], w1, b1, w2, b2))
    out_odd = jax.block_until_ready(
        gcn_forward(adj[:n_odd, :n_odd], x[:n_odd], w1, b1, w2, b2))
    assert out_odd.shape == (n_odd, N_CLASSES)
    err_odd = float(jnp.max(jnp.abs(out_odd - ref_odd)))
    assert jnp.allclose(out_odd, ref_odd, atol=5e-2, rtol=5e-2), err_odd

    print("KERNEL_OK")
</pallas_src>

<mosaic_0001>
module attributes {stable_mosaic.version = 11 : i64} {
  func.func @degree_cast_kernel(%arg0: i32, %arg1: memref<64x128xf32, #tpu.memory_space<vmem>>, %arg2: memref<1x128xf32, #tpu.memory_space<vmem>>, %arg3: memref<64x128xi8, #tpu.memory_space<vmem>>) attributes {dimension_semantics = [#tpu.dimension_semantics<arbitrary>], iteration_bounds = array<i64: 2>, scalar_prefetch = 0 : i64, scratch_operands = 0 : i64, tpu.core_type = #tpu.core_type<tc>, window_params = [{transform_indices = @transform_0, window_bounds = array<i64: 64, 128>}, {pipeline_mode = #tpu.pipeline_mode<synchronous>, transform_indices = @transform_1, window_bounds = array<i64: 1, 128>}, {transform_indices = @transform_2, window_bounds = array<i64: 64, 128>}]} {
    %c0 = arith.constant 0 : index
    %c0_0 = arith.constant 0 : index
    %0 = vector.load %arg1[%c0, %c0_0] : memref<64x128xf32, #tpu.memory_space<vmem>>, vector<64x128xf32>
    %1 = arith.fptosi %0 : vector<64x128xf32> to vector<64x128xi8>
    %c0_1 = arith.constant 0 : index
    %c0_2 = arith.constant 0 : index
    %2 = vector.load %arg3[%c0_1, %c0_2] : memref<64x128xi8, #tpu.memory_space<vmem>>, vector<64x128xi8>
    tpu.vector_store %arg3[%c0_1, %c0_2], %1 {strides = array<i32>} : memref<64x128xi8, #tpu.memory_space<vmem>>, vector<64x128xi8>,
    %c0_i32 = arith.constant 0 : i32
    %3 = arith.cmpi eq, %arg0, %c0_i32 : i32
    %4 = arith.extui %3 : i1 to i32
    %c0_i32_3 = arith.constant 0 : i32
    %5 = arith.cmpi ne, %4, %c0_i32_3 : i32
    scf.if %5 {
      %cst_9 = arith.constant 0.000000e+00 : f32
      %14 = vector.broadcast %cst_9 : f32 to vector<1x128xf32>
      %c0_10 = arith.constant 0 : index
      %c0_11 = arith.constant 0 : index
      %15 = vector.load %arg2[%c0_10, %c0_11] : memref<1x128xf32, #tpu.memory_space<vmem>>, vector<1x128xf32>
      tpu.vector_store %arg2[%c0_10, %c0_11], %14 {strides = array<i32>} : memref<1x128xf32, #tpu.memory_space<vmem>>, vector<1x128xf32>,
    } else {
    }
    %c0_4 = arith.constant 0 : index
    %c0_5 = arith.constant 0 : index
    %6 = vector.load %arg2[%c0_4, %c0_5] : memref<1x128xf32, #tpu.memory_space<vmem>>, vector<1x128xf32>
    %cst = arith.constant dense<0.000000e+00> : vector<128xf32>
    %7 = vector.multi_reduction <add>, %0, %cst [0] : vector<64x128xf32> to vector<128xf32>
    %8 = vector.shape_cast %7 : vector<128xf32> to vector<1x128xf32>
    %9 = arith.addf %6, %8 : vector<1x128xf32>
    %c0_6 = arith.constant 0 : index
    %c0_7 = arith.constant 0 : index
    %10 = vector.load %arg2[%c0_6, %c0_7] : memref<1x128xf32, #tpu.memory_space<vmem>>, vector<1x128xf32>
    tpu.vector_store %arg2[%c0_6, %c0_7], %9 {strides = array<i32>} : memref<1x128xf32, #tpu.memory_space<vmem>>, vector<1x128xf32>,
    %c1_i32 = arith.constant 1 : i32
    %11 = arith.cmpi eq, %arg0, %c1_i32 : i32
    %12 = arith.extui %11 : i1 to i32
    %c0_i32_8 = arith.constant 0 : i32
    %13 = arith.cmpi ne, %12, %c0_i32_8 : i32
    scf.if %13 {
      %c0_9 = arith.constant 0 : index
      %c0_10 = arith.constant 0 : index
      %14 = vector.load %arg2[%c0_9, %c0_10] : memref<1x128xf32, #tpu.memory_space<vmem>>, vector<1x128xf32>
      %cst_11 = arith.constant 1.000000e+00 : f32
      %15 = vector.broadcast %cst_11 : f32 to vector<1x128xf32>
      %16 = arith.addf %14, %15 : vector<1x128xf32>
      %cst_12 = arith.constant 0.000000e+00 : f32
      %17 = vector.broadcast %cst_12 : f32 to vector<1x128xf32>
      %18 = arith.cmpf ogt, %16, %17 : vector<1x128xf32>
      %19 = math.rsqrt %16 : vector<1x128xf32>
      %cst_13 = arith.constant 0.000000e+00 : f32
      %20 = vector.broadcast %cst_13 : f32 to vector<1x128xf32>
      %21 = arith.select %18, %19, %20 : vector<1x128xi1>, vector<1x128xf32>
      %c0_14 = arith.constant 0 : index
      %c0_15 = arith.constant 0 : index
      %22 = vector.load %arg2[%c0_14, %c0_15] : memref<1x128xf32, #tpu.memory_space<vmem>>, vector<1x128xf32>
      tpu.vector_store %arg2[%c0_14, %c0_15], %21 {strides = array<i32>} : memref<1x128xf32, #tpu.memory_space<vmem>>, vector<1x128xf32>,
    } else {
    }
    return
  }
  func.func @transform_0(%arg0: i32) -> (i32, i32) {
    %c0_i32 = arith.constant 0 : i32
    %c0_i32_0 = arith.constant 0 : i32
    return %arg0, %c0_i32 : i32, i32
  }
  func.func @transform_1(%arg0: i32) -> (i32, i32) {
    %c0_i32 = arith.constant 0 : i32
    %c0_i32_0 = arith.constant 0 : i32
    %c0_i32_1 = arith.constant 0 : i32
    return %c0_i32, %c0_i32_0 : i32, i32
  }
  func.func @transform_2(%arg0: i32) -> (i32, i32) {
    %c0_i32 = arith.constant 0 : i32
    %c0_i32_0 = arith.constant 0 : i32
    return %arg0, %c0_i32 : i32, i32
  }
}

</mosaic_0001>

<bundles_post_ra>
// kernel: tpu_custom_call.1
= control target key start
LH: loop header
LB: loop body
LE: loop exit
PB: predicated region body
PF: predicated region fallthrough
CT: control target
= control target key end

     0   :  { %8 = vsyncpa [#allocation3], 0  ;;  %s761_s0 = inlined_call_operand.hbm [shape: f32[128,128], index: 0, kind: input, shape index: {}]   ;;  %s762_s1 = inlined_call_operand.hbm [shape: f32[1,128], index: 1, kind: output, shape index: {0}]   ;;  %s763_s2 = inlined_call_operand.hbm [shape: s8[128,128], index: 2, kind: output, shape index: {1}]  }
   0x1   :  { %10 = vsyncpa [#allocation3 + $0x1], 0 }
   0x2   :  { %11 = vsyncpa [#allocation4], 0 }
   0x3   :  { %12 = vsyncpa [#allocation7], 0 }
   0x4   :  { %14 = vsyncpa [#allocation7 + $0x1], 0  ;;  %s586_s9 = smov 0   ;;  %s588_s10 = smov 0  }
   0x5   :  { %s590_s11 = smov 0   ;;  %s592_s12 = smov 0  }
   0x6 LB: > { %s607_s13 = sadd.s32 4294967295, %s561_s12   ;;  %s345_s14 = sadd.s32 4294967294, %s561_s12   ;;  %s561_s12 = sphi %s592_s12, %s783_s12   ;;  %s557_s11 = sphi %s590_s11, %s782_s11   ;;  %s553_s10 = sphi %s588_s10, %s781_s10   ;;  %s549_s9 = sphi %s586_s9, %s780_s9  }
   0x7   : > { %s611_s15 = sadd.s32 1, %s561_s12   ;;  %s27_s16 = sadd.s32 1, %s557_s11 }
   0x8   : > { %s24_s17 = ssub.s32 %s561_s12, %s611_s15  ;;  %p34_p0 = scmp.ne.s32.totalorder %s557_s11, %s553_s10 }
   0x9   : > { %p25_p1 = scmp.eq.s32.totalorder %s24_s17, 0  ;;  %p35_p2 = scmp.eq.s32.totalorder %s561_s12, 0 }
   0xa   : > { %p40_p3 = scmp.ne.s32.totalorder %s553_s10, %s549_s9  ;;  %p41_p4 = scmp.eq.s32.totalorder %s607_s13, 0 }
   0xb   : > { %s623_s18 = scalar_select %p25_p1, %s557_s11, %s27_s16  }
   0xc   : > { %p625_p5 = por %p35_p2, %p34_p0  ;;  %p629_p6 = por %p41_p4, %p40_p3 }
   0xd   : > { %p764_p7 = scmp.eq.s32.totalorder %s607_s13, 1  ;;  %p91_p8 = scmp.eq.s32.totalorder %s345_s14, 1 }
   0xe   : > { %s768_s20 = scalar_select %p629_p6, 1, 0 }
   0xf   : > { %p397_p10 = scmp.lt.s32.totalorder %s561_s12, 2  ;;  %p638_p11 = por %p764_p7, %p34_p0 }
  0x10   : > { %p642_p12 = por %p91_p8, %p40_p3  ;;  %s111_s23 = sand.u32 1, %s557_s11  }
  0x11   : > { %s769_s21 = scalar_select %p638_p11, 1, 0 }
  0x12   : > { %s770_s22 = scalar_select %p642_p12, 1, 0 }
  0x13   : > { %s363_s24 = sshll.u32 %s561_s12, 10  ;;  %s348_s25 = sshll.u32 %s111_s23, 6 }
  0x14   : > { %s651_s28 = scalar_lea.hbm %s761_s0, %s363_s24  ;;  %s115_s29 = scalar_lea.vmem [#allocation2], %s348_s25 }
  0x15   : > { %s122_s30 = sshll.u32 %s115_s29, 4  ;;  %p655_p13 = pnand %p397_p10, %p625_p5  ;;  %s659_s30 = int_to_ptr.vmem [resolvable:$true] %s122_s30 }
  0x16   : > { %s661_s4 = scalar_lea.sflag [#allocation3], %s111_s23  ;;  %s441_s5 = scalar_lea.hbm %s651_s28, 1024 }
  0x17   : > { %p442_p0 = scmp.ne.s32.totalorder %s651_s28, %s441_s5  ;;  %p443_p1 = pneg %p655_p13 }
  0x18   : > { %s446_s8 = scalar_lea.hbm %s761_s0, 2048  ;;  %p447_p4 = scmp.lt.s32.totalorder %s651_s28, %s761_s0 }
  0x19   : > { %p444_p2 = pnand %p443_p1, %p442_p0  ;;  %p448_p5 = scmp.lt.s32.totalorder %s446_s8, %s441_s5 }
  0x1b   : > { %p445_p3 = pneg %p444_p2  ;;  %p449_p8 = por %p448_p5, %p447_p4 }
  0x1d   : > { %p450_p10 = pnand %p449_p8, %p445_p3 }
  0x1f   : > { %453 = shalt.err (!%p450_p10)
}
  0x20   : > { %s454_s17 = scalar_lea.vmem %s659_s30, 1024  ;;  %s563_s19 = smov [#allocation2]  }
  0x21   : > { %p455_p9 = scmp.ne.s32.totalorder %s659_s30, %s454_s17  ;;  %s459_s23 = sshll.u32 %s563_s19, 4  ;;  %s460_s23 = int_to_ptr.vmem [resolvable:$false] %s459_s23 }
  0x22   : > { %s461_s24 = scalar_lea.vmem %s460_s23, 2048  ;;  %p462_p2 = scmp.lt.s32.totalorder %s659_s30, %s460_s23 }
  0x23   : > { %p457_p7 = pnand %p455_p9, %p443_p1  ;;  %p463_p12 = scmp.lt.s32.totalorder %s461_s24, %s454_s17 }
  0x25   : > { %p458_p0 = pneg %p457_p7  ;;  %p464_p11 = por %p463_p12, %p462_p2 }
  0x27   : > { %p465_p6 = pnand %p464_p11, %p458_p0 }
  0x29   : > { %468 = shalt.err (!%p465_p6)
}
  0x2a   : > { %s564_s25 = smov 128   ;;  %s565_s26 = smov 8  }
  0x2b   : > { %392 = dma.hbm_to_vmem [thread:$0]  (!%p655_p13), %s651_s28, 1024, %s659_s30, %s661_s4, %s564_s25, %s564_s25, %s565_s26  }
  0x2c   : > { %p351_p7 = scmp.ge.s32.totalorder %s561_s12, 1  ;;  %p130_p9 = scmp.lt.s32.totalorder %s561_s12, 3 }
  0x2e   : > { %p131_p1 = pnand %p351_p7, %p130_p9 }
  0x2f   : > { %s685_s27 = sand.u32 (!%p131_p1), 1, %s553_s10   ;;  %p772_p6 = scmp.ne.s32.totalorder (!%p131_p1), %s768_s20, 0 }
  0x30   : > { %134 = sbr.rel (%p131_p1) target bundleno = 170 (0xaa), region = 24  ;;  %s352_s29 = sshll.u32 (!%p131_p1), %s685_s27, 6 }
  0x31   : > { %s137_s5 = scalar_lea.sflag (!%p131_p1), [#allocation3], %s685_s27  ;;  %s140_s6 = scalar_lea.vmem (!%p131_p1), [#allocation2], %s352_s29 }
  0x35   : > { %536 = dma.done.wait (%p772_p6), %s137_s5, 1024  }
  0x36   : > { %538 = vsyncadd (%p772_p6), %s137_s5, 4294966272  ;;  %v163_v0 = vld [vmem:[%s140_s6] sm:$0xff]  ;;  %v164_v1 = vld [vmem:[%s140_s6 + $0x8] sm:$0xff]  ;;  %s353_s20 = sshll.u32 %s685_s27, 4  ;;  %p354_p11 = scmp.ne.s32.totalorder %s607_s13, 0 }
  0x37   : > { %v165_v2 = vld [vmem:[%s140_s6 + $0x10] sm:$0xff]  ;;  %v166_v3 = vld [vmem:[%s140_s6 + $0x18] sm:$0xff]  ;;  %v171_v4 = vmax.f32 %v163_v0, -128.0  ;;  %v172_v5 = vmax.f32 %v164_v1, -128.0  ;;  %v167_v7 = vld [vmem:[%s140_s6 + $0x20] sm:$0xff]  ;;  %s694_s28 = scalar_lea.vmem [#allocation6], %s353_s20 }
  0x38   : > { %v173_v6 = vmax.f32 %v165_v2, -128.0  ;;  %v168_v8 = vld [vmem:[%s140_s6 + $0x28] sm:$0xff]  ;;  %v174_v9 = vmax.f32 %v166_v3, -128.0  ;;  %v169_v10 = vld [vmem:[%s140_s6 + $0x30] sm:$0xff]  ;;  %v170_v11 = vld [vmem:[%s140_s6 + $0x38] sm:$0xff]  ;;  %v175_v12 = vmax.f32 %v167_v7, -128.0 }
  0x39   : > { %v176_v13 = vmax.f32 %v168_v8, -128.0  ;;  %v179_v14 = vmin.f32 %v171_v4, 127.0  ;;  %v180_v15 = vmin.f32 %v172_v5, 127.0  ;;  %v177_v17 = vmax.f32 %v169_v10, -128.0 }
  0x3a   : > { %v181_v16 = vmin.f32 %v173_v6, 127.0  ;;  %v182_v18 = vmin.f32 %v174_v9, 127.0  ;;  %v178_v19 = vmax.f32 %v170_v11, -128.0  ;;  %v183_v20 = vmin.f32 %v175_v12, 127.0 }
  0x3b   : > { %v184_v21 = vmin.f32 %v176_v13, 127.0  ;;  %v365_v22 = vtrunc.f32 %v179_v14  ;;  %v367_v23 = vtrunc.f32 %v180_v15  ;;  %v185_v25 = vmin.f32 %v177_v17, 127.0 }
  0x3c   : > { %v369_v24 = vtrunc.f32 %v181_v16  ;;  %v371_v26 = vtrunc.f32 %v182_v18  ;;  %v186_v27 = vmin.f32 %v178_v19, 127.0  ;;  %v373_v28 = vtrunc.f32 %v183_v20 }
  0x3d   : > { %v375_v29 = vtrunc.f32 %v184_v21  ;;  %v366_v30 = vcvt.f32.s32 %v365_v22  ;;  %v368_v31 = vcvt.f32.s32 %v367_v23  ;;  %v377_v33 = vtrunc.f32 %v185_v25 }
  0x3e   : > { %v370_v32 = vcvt.f32.s32 %v369_v24  ;;  %v372_v34 = vcvt.f32.s32 %v371_v26  ;;  %v374_v35 = vcvt.f32.s32 %v373_v28  ;;  %v379_v37 = vtrunc.f32 %v186_v27 }
  0x3f   : > { %v376_v36 = vcvt.f32.s32 %v375_v29  ;;  %v195_v38 = vpack.c.b16 %v368_v31, %v366_v30  ;;  %v378_v39 = vcvt.f32.s32 %v377_v33 }
  0x40   : > { %v196_v40 = vpack.c.b16 %v372_v34, %v370_v32  ;;  %v380_v41 = vcvt.f32.s32 %v379_v37 }
  0x41   : > { %v198_v42 = vpack.c.b16 %v376_v36, %v374_v35 }
  0x42   : > { %v197_v43 = vpack.c.b8 %v196_v40, %v195_v38  ;;  %v199_v44 = vpack.c.b16 %v380_v41, %v378_v39  ;;  %206 = sbr.rel (%p354_p11) target bundleno = 73 (0x49), region = 32 }
  0x44   : > { %201 = vst [vmem:[%s694_s28] sm:$0xff] %v197_v43  ;;  %v200_v45 = vpack.c.b8 %v199_v44, %v198_v42 }
  0x46   : > { %202 = vst [vmem:[%s694_s28 + $0x8] sm:$0xff] %v200_v45 }
  0x47   : > { %v566_v46 = vmov 0.0  }
  0x48   : > { %207 = vst [vmem:[#allocation5] sm:$0x1] %v566_v46 }
  0x49 PF: > { %v209_v47 = vadd.f32 %v164_v1, %v163_v0  ;;  %p355_p12 = scmp.ne.s32.totalorder %s607_s13, 1 }
  0x4b   : > { %v210_v48 = vadd.f32 %v209_v47, %v165_v2 }
  0x4d   : > { %v211_v49 = vadd.f32 %v210_v48, %v166_v3 }
  0x4f   : > { %v212_v50 = vadd.f32 %v211_v49, %v167_v7  ;;  %v208_v59 = vld [vmem:[#allocation5] sm:$0x1] }
  0x51   : > { %v213_v51 = vadd.f32 %v212_v50, %v168_v8 }
  0x53   : > { %v214_v52 = vadd.f32 %v213_v51, %v169_v10 }
  0x55   : > { %v215_v53 = vadd.f32 %v214_v52, %v170_v11 }
  0x57   : > { %v216_v54 = vrot.slane %v215_v53, 4 }
  0x59   : > { %v217_v55 = vadd.f32 %v216_v54, %v215_v53 }
  0x5b   : > { %v218_v56 = vrot.slane %v217_v55, 2 }
  0x5d   : > { %v219_v57 = vadd.f32 %v218_v56, %v217_v55 }
  0x5f   : > { %v220_v58 = vrot.slane %v219_v57, 1 }
  0x61   : > { %v221_v60 = vadd.f32 %v220_v58, %v219_v57  ;;  %227 = sbr.rel (%p355_p12) target bundleno = 127 (0x7f), region = 36 }
  0x63   : > { %v222_v61 = vadd.f32 %v221_v60, %v208_v59 }
  0x65   : > { %223 = vst [vmem:[#allocation5] sm:$0x1] %v222_v61 }
  0x6c   : > { %v228_v62 = vld [vmem:[#allocation5] sm:$0x1] }
  0x6d   : > { %v229_v63 = vadd.f32 1.0, %v228_v62 }
  0x6f   : > { %439 = vrsqrt.f32 %v229_v63  ;;  %vm230_vm0 = vcmp.gt.f32.partialorder %v229_v63, 0.0 }
  0x7c   : > { %v440_v0 = vpop.eup %439 }
  0x7d   : > { %v232_v1 = vsel %vm230_vm0, %v440_v0, 0.0 }
  0x7e   : > { %233 = vst [vmem:[#allocation5] sm:$0x1] %v232_v1 }
  0x7f PF: > { %s567_s30 = smov [#allocation5]   ;;  %s364_s4 = sshll.u32 %s607_s13, 8 }
  0x80   : > { %s246_s3 = sshll.u32 %s567_s30, 4  ;;  %s704_s14 = scalar_lea.hbm %s763_s2, %s364_s4  ;;  %s247_s3 = int_to_ptr.vmem [resolvable:$true] %s246_s3 }
  0x81   : > { %s469_s16 = scalar_lea.vmem %s247_s3, 16  ;;  %p773_p3 = scmp.eq.s32.totalorder %s607_s13, 1 }
  0x82   : > { %p470_p13 = scmp.ne.s32.totalorder %s247_s3, %s469_s16  ;;  %s475_s17 = scalar_lea.vmem %s247_s3, 32 }
  0x83   : > { %p476_p8 = scmp.lt.s32.totalorder %s247_s3, %s247_s3  ;;  %p477_p10 = scmp.lt.s32.totalorder %s475_s17, %s469_s16 }
  0x84   : > { %p471_p4 = pnand %p470_p13, %p773_p3 }
  0x85   : > { %p478_p0 = por %p477_p10, %p476_p8 }
  0x86   : > { %p472_p5 = pneg %p471_p4 }
  0x88   : > { %p479_p2 = pnand %p478_p0, %p472_p5 }
  0x8a   : > { %482 = shalt.err (!%p479_p2)
}
  0x8b   : > { %p774_p7 = pmov %p773_p3  ;;  %s259_s24 = sshll.u32 %s694_s28, 4  ;;  %s714_s24 = int_to_ptr.vmem [resolvable:$true] %s259_s24 }
  0x8c   : > { %s235_s25 = scalar_lea.sflag [#allocation7], %s685_s27  ;;  %s493_s26 = scalar_lea.vmem %s714_s24, 256 }
  0x8d   : > { %384 = dma.vmem_to_hbm [thread:$0]  (%p774_p7), %s247_s3, 16, %s762_s1, [#allocation4]  }
  0x8e   : > { %p494_p9 = scmp.ne.s32.totalorder %s714_s24, %s493_s26  ;;  %p775_p1 = scmp.ne.s32.totalorder %s769_s21, 0 }
  0x8f   : > { %s568_s29 = smov [#allocation6]  }
  0x90   : > { %p495_p6 = pnand %p494_p9, %p775_p1  ;;  %s497_s5 = sshll.u32 %s568_s29, 4  ;;  %s498_s5 = int_to_ptr.vmem [resolvable:$false] %s497_s5 }
  0x91   : > { %s499_s6 = scalar_lea.vmem %s498_s5, 512  ;;  %p500_p12 = scmp.lt.s32.totalorder %s714_s24, %s498_s5 }
  0x92   : > { %p496_p11 = pneg %p495_p6  ;;  %p501_p13 = scmp.lt.s32.totalorder %s499_s6, %s493_s26 }
  0x94   : > { %p502_p3 = por %p501_p13, %p500_p12 }
  0x96   : > { %p503_p4 = pnand %p502_p3, %p496_p11 }
  0x98   : > { %506 = shalt.err (!%p503_p4)
}
  0x99   : > { %s507_s20 = scalar_lea.hbm %s704_s14, 256  ;;  %s511_s3 = scalar_lea.hbm %s763_s2, 512 }
  0x9a   : > { %p508_p5 = scmp.ne.s32.totalorder %s704_s14, %s507_s20  ;;  %p512_p0 = scmp.lt.s32.totalorder %s704_s14, %s763_s2 }
  0x9b   : > { %p513_p2 = scmp.lt.s32.totalorder %s511_s3, %s507_s20 }
  0x9c   : > { %p509_p8 = pnand %p508_p5, %p775_p1 }
  0x9d   : > { %p514_p7 = por %p513_p2, %p512_p0 }
  0x9e   : > { %p510_p10 = pneg %p509_p8 }
  0xa0   : > { %p515_p9 = pnand %p514_p7, %p510_p10 }
  0xa2   : > { %518 = shalt.err (!%p515_p9)
}
  0xa3   : > { %s569_s8 = smov 128   ;;  %s570_s16 = smov 8  }
  0xa4   : > { %385 = dma.vmem_to_hbm [thread:$0]  (%p775_p1), %s714_s24, 256, %s704_s14, %s235_s25, %s569_s8, %s569_s8, %s570_s16  }
  0xa5   : > { %p776_p6 = scmp.eq.s32.totalorder %s607_s13, 1 }
  0xa7   : > { %540 = dma.done.wait (%p776_p6), [#allocation4], 16   ;;  %p777_p11 = pmov %p776_p6 }
  0xa9   : > { %542 = vsyncadd (%p777_p11), [#allocation4], 4294967280 }
  0xaa PF: > { %s278_s17 = sand.u32 1, %s549_s9   ;;  %p778_p12 = scmp.ne.s32.totalorder %s770_s22, 0 }
  0xab   : > { %p779_p13 = scmp.ge.s32.totalorder %s561_s12, 2  ;;  %s279_s19 = scalar_lea.sflag [#allocation7], %s278_s17 }
  0xad   : > { %p394_p3 = pnand %p779_p13, %p778_p12 }
  0xaf   : > { %p395_p4 = pneg %p394_p3 }
  0xb1   : > { %544 = dma.done.wait (%p395_p4), %s279_s19, 256  }
  0xb2   : > { %546 = vsyncadd (%p395_p4), %s279_s19, 4294967040  ;;  %p17_p1 = scmp.ge.s32.totalorder %s611_s15, 4   ;;  %s780_s9 = smov %s553_s10 }
  0xb3   : > { %s781_s10 = smov %s557_s11  ;;  %s782_s11 = smov %s623_s18 }
  0xb4   : > { %s783_s12 = smov %s611_s15  ;;  %19 = sbr.rel (!%p17_p1) target bundleno = 6 (0x6), region = 86 }
  0xb9   :  { %284 = vsyncpa [#allocation3], 1 }
  0xba   :  { %286 = vsyncpa [#allocation3 + $0x1], 1 }
  0xbb   :  { %287 = vsyncpa [#allocation4], 1 }
  0xbc   :  { %289 = vsyncpa [#allocation4 + $0x1], 1 }
  0xbd   :  { %290 = vsyncpa [#allocation7], 1 }
  0xbe   :  { %292 = vsyncpa [#allocation7 + $0x1], 1 }

</bundles_post_ra>
